<compile_context>
chip_gen: v7x
topology: tpu7x:2x2x1
jax: 0.10.0
libtpu: 0.0.40
codegen_flags: <defaults>
</compile_context>

<pallas_src>
from functools import partial

import jax
import jax.numpy as jnp
from jax.experimental import pallas as pl
from jax.experimental.pallas import tpu as pltpu

_LANE = 128
_SUBLANE = 8


def _pad_to(n: int, m: int) -> int:
    return ((n + m - 1) // m) * m


def _row_quantum(dtype) -> int:
    """Sublane packing quantum: 8 rows for f32, 16 for bf16, 32 for int8/fp8."""
    itemsize = jnp.dtype(dtype).itemsize
    return _SUBLANE * max(1, 4 // itemsize)


def _vmem_budget_bytes() -> int:
    """~3/4 of per-TensorCore VMEM; conservative (64 MiB) fallback."""
    cap = 64 << 20
    try:
        info = pltpu.get_tpu_info()
        c = int(getattr(info, "vmem_capacity_bytes"))
        # Some backends report per-chip capacity; clamp to per-TC on multi-TC
        # chips (v7x: 2 TCs x 64 MiB) so vmem_limit never exceeds the core.
        ntc = (getattr(info, "num_tensorcores", None)
               or getattr(info, "tensorcores_per_chip", None))
        if ntc and int(ntc) > 1:
            c //= int(ntc)
        ver = str(getattr(info, "chip_version", "")).lower()
        if "7" in ver:
            c = min(c, 64 << 20)
        cap = min(c, 128 << 20)
    except Exception:
        pass
    return (cap * 3) // 4


def _footprint_bytes(tm, tk, w_buffers, E_pad, x_bytes, w_bytes):
    """Tight per-step VMEM estimate for a (tm rows, tk M-chunk) tiling."""
    weights = w_buffers * (2 * E_pad * tk * w_bytes + tk * 4)   # w1,w2 chunks + b1 chunk
    resident = 3 * E_pad * 4                                     # b2, gamma, beta
    io = 2 * (tm * E_pad * x_bytes) * 2                          # x + out tiles, double-buffered
    acc = tm * E_pad * 4                                         # f32 accumulator
    interm = tm * (tk + E_pad) * 4 + tm * tk * w_bytes           # h (f32 + cast) + partial dot
    return weights + resident + io + acc + interm


def _choose_m_tile(M_pad, E_pad, r_q, x_bytes, w_bytes, budget):
    """Largest M-chunk (divisor of M_pad, multiple of 128) fitting the budget."""
    tm_ref = min(r_q, 256)  # MXU-friendly reference row tile
    cands = sorted({M_pad // n for n in range(1, M_pad // _LANE + 1)
                    if M_pad % n == 0 and (M_pad // n) % _LANE == 0},
                   reverse=True)
    for tk in cands:
        w_buffers = 1 if tk == M_pad else 2   # resident vs. streamed (pipelined)
        if _footprint_bytes(tm_ref, tk, w_buffers, E_pad, x_bytes, w_bytes) <= budget:
            return tk, w_buffers
    return cands[-1], 2   # best effort


def _choose_tile_rows(R, E_pad, tk, w_buffers, x_bytes, w_bytes, budget, quantum):
    """Row tile: biggest that fits VMEM, >=4 grid steps when R is large,
    padded work capped at ~10%."""
    r_q = _pad_to(max(R, quantum), quantum)

    cands = []
    c = quantum
    while c <= min(r_q, 4096):
        cands.append(c)
        c *= 2
    if r_q <= 4096:
        cands.append(r_q)
    cands = sorted(set(cands))

    fitting = [t for t in cands
               if _footprint_bytes(t, tk, w_buffers, E_pad, x_bytes, w_bytes) <= budget]
    if not fitting:
        return quantum

    # Grid-step cap: keep v7x's 2 TCs fed and DMA/compute overlapped, but never
    # at the cost of dropping below ~256-row tiles (256-wide MXU on v6e/v7x).
    if r_q >= 4 * 256:
        cap = max(256, (r_q // 4) // quantum * quantum)
    elif r_q >= 2 * 256:
        cap = max(quantum, (r_q // 2) // quantum * quantum)
    else:
        cap = r_q
    allowed = [t for t in fitting if t <= cap] or fitting[:1]
    tm = allowed[-1]

    # Avoid padding R up to a much larger multiple of tm (<= ~10% waste).
    def padded(t):
        return pl.cdiv(R, t) * t
    for _ in range(len(allowed)):
        if padded(tm) <= max(r_q, int(1.10 * R)):
            break
        smaller = [t for t in allowed if t < tm]
        if not smaller or padded(smaller[-1]) >= padded(tm):
            break
        tm = smaller[-1]
    return tm


def _spec(block_shape, index_map, buffer_count=None):
    """BlockSpec, optionally single/multi-buffered; falls back if unsupported."""
    if buffer_count is not None:
        try:
            return pl.BlockSpec(block_shape, index_map,
                                pipeline_mode=pl.Buffered(buffer_count))
        except TypeError:
            pass
        except Exception:
            pass
    return pl.BlockSpec(block_shape, index_map)


def _mlp_block_kernel(*refs, skip_connection: bool, layer_norm: bool,
                      eps: float, e_real: int, single_m_chunk: bool):
    if single_m_chunk:
        acc_ref, rest = None, refs
    else:
        acc_ref, rest = refs[-1], refs[:-1]
    if layer_norm:
        x_ref, w1_ref, b1_ref, w2_ref, b2_ref, g_ref, beta_ref, o_ref = rest
    else:
        x_ref, w1_ref, b1_ref, w2_ref, b2_ref, o_ref = rest
        g_ref = beta_ref = None

    x = x_ref[...]                                          # (TM, E_pad) storage dtype

    # lin1 + bias + ReLU. Operands stay in storage dtype (bf16 hits the bf16
    # MXU path); accumulation is f32; elementwise math in f32.
    h = jnp.dot(x, w1_ref[...], preferred_element_type=jnp.float32)
    h = jnp.maximum(h + b1_ref[...], 0.0)                   # (TM, TK) f32

    # dropout -> identity (eval mode)

    # lin2 partial product for this M chunk.
    part = jnp.dot(h.astype(w2_ref.dtype), w2_ref[...],
                   preferred_element_type=jnp.float32)      # (TM, E_pad) f32

    def finalize(acc):
        out = acc + b2_ref[...]
        if skip_connection:
            out = out + x.astype(jnp.float32)
        if layer_norm:
            # Padded E columns of `out` are exactly zero (w2/b2/x/skip all
            # zero-padded), so unmasked sums over E_pad equal sums over E.
            inv_e = 1.0 / e_real
            mean = jnp.sum(out, axis=-1, keepdims=True) * inv_e
            msq = jnp.sum(out * out, axis=-1, keepdims=True) * inv_e
            var = jnp.maximum(msq - mean * mean, 0.0)
            inv = jax.lax.rsqrt(var + eps)
            out = (out - mean) * inv * g_ref[...] + beta_ref[...]
        o_ref[...] = out.astype(o_ref.dtype)

    if single_m_chunk:
        finalize(part)
    else:
        k = pl.program_id(1)

        @pl.when(k == 0)
        def _():
            acc_ref[...] = jnp.zeros_like(acc_ref)

        acc_ref[...] += part

        @pl.when(k == pl.num_programs(1) - 1)
        def _():
            finalize(acc_ref[...])


def prepare_mlp_params(w1, b1, w2, b2, gamma=None, beta=None, param_dtype=None):
    """One-time prep: (optionally) cast weights, transpose to (in, out), and
    zero-pad dims to multiples of 128.

    PyTorch convention: w1 (M, E), b1 (M,), w2 (E, M), b2 (E,).
    param_dtype=jnp.bfloat16 stores weights bf16 (MXU-native on v6e/v7x)."""
    M, E = w1.shape
    E_pad, M_pad = _pad_to(E, _LANE), _pad_to(M, _LANE)
    if param_dtype is not None:
        w1 = w1.astype(param_dtype)
        w2 = w2.astype(param_dtype)
    w1t = jnp.pad(jnp.transpose(w1), ((0, E_pad - E), (0, M_pad - M)))
    w2t = jnp.pad(jnp.transpose(w2), ((0, M_pad - M), (0, E_pad - E)))
    b1p = jnp.pad(b1.astype(jnp.float32), (0, M_pad - M)).reshape(1, M_pad)
    b2p = jnp.pad(b2.astype(jnp.float32), (0, E_pad - E)).reshape(1, E_pad)
    if gamma is None:
        gamma = jnp.ones((E,), jnp.float32)
    if beta is None:
        beta = jnp.zeros((E,), jnp.float32)
    gp = jnp.pad(gamma.astype(jnp.float32), (0, E_pad - E)).reshape(1, E_pad)
    bp = jnp.pad(beta.astype(jnp.float32), (0, E_pad - E)).reshape(1, E_pad)
    return dict(w1=w1t, b1=b1p, w2=w2t, b2=b2p, gamma=gp, beta=bp, e=E, m=M)


def mlp_block(x, params, *, skip_connection=False, layer_norm=False, eps=1e-5):
    """x: (..., E); params from prepare_mlp_params()."""
    orig_shape = x.shape
    E = params["e"]
    assert orig_shape[-1] == E
    w1, b1, w2, b2 = params["w1"], params["b1"], params["w2"], params["b2"]
    E_pad, M_pad = w1.shape

    x2d = x.reshape(-1, E)
    R = x2d.shape[0]
    x_bytes = jnp.dtype(x.dtype).itemsize
    w_bytes = jnp.dtype(w1.dtype).itemsize
    quantum = _row_quantum(x.dtype)

    budget = _vmem_budget_bytes()
    r_q = _pad_to(max(R, quantum), quantum)
    tk, w_buffers = _choose_m_tile(M_pad, E_pad, r_q, x_bytes, w_bytes, budget)
    tm = _choose_tile_rows(R, E_pad, tk, w_buffers, x_bytes, w_bytes, budget, quantum)

    R_pad = pl.cdiv(R, tm) * tm
    if R_pad != R or E_pad != E:
        x2d = jnp.pad(x2d, ((0, R_pad - R), (0, E_pad - E)))

    n_rows = R_pad // tm
    n_k = M_pad // tk
    grid = (n_rows, n_k)
    single_m_chunk = (n_k == 1)

    kernel = partial(_mlp_block_kernel, skip_connection=skip_connection,
                     layer_norm=layer_norm, eps=eps, e_real=E,
                     single_m_chunk=single_m_chunk)

    # Resident constant operands -> single-buffered; streamed M-chunks keep the
    # default double-buffering so the weight DMA pipelines under compute.
    wb = 1 if single_m_chunk else None
    in_specs = [
        pl.BlockSpec((tm, E_pad), lambda i, k: (i, 0)),          # x (pipelined over rows)
        _spec((E_pad, tk), lambda i, k: (0, k), wb),             # w1^T chunk
        _spec((1, tk), lambda i, k: (0, k), wb),                 # b1 chunk
        _spec((tk, E_pad), lambda i, k: (k, 0), wb),             # w2^T chunk
        _spec((1, E_pad), lambda i, k: (0, 0), 1),               # b2 (resident)
    ]
    args = [x2d, w1, b1, w2, b2]
    if layer_norm:
        in_specs += [_spec((1, E_pad), lambda i, k: (0, 0), 1),  # gamma
                     _spec((1, E_pad), lambda i, k: (0, 0), 1)]  # beta
        args += [params["gamma"], params["beta"]]

    scratch_shapes = [] if single_m_chunk else [pltpu.VMEM((tm, E_pad), jnp.float32)]

    flops = 4 * R_pad * E_pad * M_pad
    weight_bytes = 2 * E_pad * M_pad * w_bytes
    bytes_accessed = (R_pad * E_pad * x_bytes * 2                 # x + out
                      + weight_bytes * (1 if single_m_chunk else n_rows)
                      + (M_pad + 3 * E_pad) * 4)                  # biases, ln params

    out = pl.pallas_call(
        kernel,
        out_shape=jax.ShapeDtypeStruct((R_pad, E_pad), x.dtype),
        grid=grid,
        in_specs=in_specs,
        out_specs=pl.BlockSpec((tm, E_pad), lambda i, k: (i, 0)),
        scratch_shapes=scratch_shapes,
        compiler_params=pltpu.CompilerParams(
            dimension_semantics=("parallel", "arbitrary"),
            vmem_limit_bytes=int(budget)),
        cost_estimate=pl.CostEstimate(
            flops=flops,
            transcendentals=(R_pad if layer_norm else 0),
            bytes_accessed=bytes_accessed),
    )(*args)

    return out[:R, :E].reshape(orig_shape)


if __name__ == "__main__":
    # Small shapes consistent with the module: batch=2, seq=8,
    # embedding_dim=32, mlp_dim=64.
    B, S, E, M = 2, 8, 32, 64

    key = jax.random.PRNGKey(0)
    kx, kw1, kb1, kw2, kb2 = jax.random.split(key, 5)

    x = jax.random.normal(kx, (B, S, E), dtype=jnp.float32)

    # PyTorch Linear shapes: weight (out, in), bias (out,).
    bound1 = 1.0 / (E ** 0.5)
    w1 = jax.random.uniform(kw1, (M, E), minval=-bound1, maxval=bound1,
                            dtype=jnp.float32)
    b1 = jax.random.uniform(kb1, (M,), minval=-bound1, maxval=bound1,
                            dtype=jnp.float32)
    bound2 = 1.0 / (M ** 0.5)
    w2 = jax.random.uniform(kw2, (E, M), minval=-bound2, maxval=bound2,
                            dtype=jnp.float32)
    b2 = jax.random.uniform(kb2, (E,), minval=-bound2, maxval=bound2,
                            dtype=jnp.float32)
    gamma = jnp.ones((E,), dtype=jnp.float32)   # nn.LayerNorm default weight
    beta = jnp.zeros((E,), dtype=jnp.float32)   # nn.LayerNorm default bias

    params = prepare_mlp_params(w1, b1, w2, b2, gamma, beta)

    # Pure-JAX reference (eval-mode dropout = identity).
    h_ref = jnp.maximum(x @ w1.T + b1, 0.0)
    mlp_ref = h_ref @ w2.T + b2
    ref1 = x + mlp_ref
    mean = jnp.mean(ref1, axis=-1, keepdims=True)
    var = jnp.mean((ref1 - mean) ** 2, axis=-1, keepdims=True)
    ref1 = (ref1 - mean) / jnp.sqrt(var + 1e-5) * gamma + beta

    # Config 1: skip + layernorm.
    out1 = mlp_block(x, params, skip_connection=True, layer_norm=True)
    jax.block_until_ready(out1)
    assert out1.shape == (B, S, E)
    assert jnp.allclose(out1, ref1, atol=1e-4, rtol=1e-4)

    # Config 2: plain MLP (no skip, no LN) — exercises the conditional-arg path.
    out2 = mlp_block(x, params, skip_connection=False, layer_norm=False)
    jax.block_until_ready(out2)
    ref2 = jnp.maximum(x @ w1.T + b1, 0.0) @ w2.T + b2
    assert jnp.allclose(out2, ref2, atol=1e-4, rtol=1e-4)

    # Config 3: bf16 weight storage (bf16 MXU path); looser tolerance since the
    # weights (and the intermediate h) are quantized to bf16.
    params_bf16 = prepare_mlp_params(w1, b1, w2, b2, gamma, beta,
                                     param_dtype=jnp.bfloat16)
    out3 = mlp_block(x, params_bf16, skip_connection=True, layer_norm=True)
    jax.block_until_ready(out3)
    assert out3.shape == (B, S, E)
    assert bool(jnp.all(jnp.isfinite(out3)))
    assert jnp.allclose(out3, ref1, atol=5e-2, rtol=5e-2)

    print("KERNEL_OK")
</pallas_src>

<mosaic_0001>
module attributes {stable_mosaic.version = 11 : i64} {
  func.func @_mlp_block_kernel(%arg0: i32, %arg1: i32, %arg2: memref<16x128xf32, #tpu.memory_space<vmem>>, %arg3: memref<128x128xf32, #tpu.memory_space<vmem>>, %arg4: memref<1x128xf32, #tpu.memory_space<vmem>>, %arg5: memref<128x128xf32, #tpu.memory_space<vmem>>, %arg6: memref<1x128xf32, #tpu.memory_space<vmem>>, %arg7: memref<1x128xf32, #tpu.memory_space<vmem>>, %arg8: memref<1x128xf32, #tpu.memory_space<vmem>>, %arg9: memref<16x128xf32, #tpu.memory_space<vmem>>) attributes {dimension_semantics = [#tpu.dimension_semantics<parallel>, #tpu.dimension_semantics<arbitrary>], iteration_bounds = array<i64: 1, 1>, scalar_prefetch = 0 : i64, scratch_operands = 0 : i64, tpu.core_type = #tpu.core_type<tc>, window_params = [{transform_indices = @transform_0, window_bounds = array<i64: 16, 128>}, {pipeline_mode = #tpu.pipeline_mode<synchronous>, transform_indices = @transform_1, window_bounds = array<i64: 128, 128>}, {pipeline_mode = #tpu.pipeline_mode<synchronous>, transform_indices = @transform_2, window_bounds = array<i64: 1, 128>}, {pipeline_mode = #tpu.pipeline_mode<synchronous>, transform_indices = @transform_3, window_bounds = array<i64: 128, 128>}, {pipeline_mode = #tpu.pipeline_mode<synchronous>, transform_indices = @transform_4, window_bounds = array<i64: 1, 128>}, {pipeline_mode = #tpu.pipeline_mode<synchronous>, transform_indices = @transform_5, window_bounds = array<i64: 1, 128>}, {pipeline_mode = #tpu.pipeline_mode<synchronous>, transform_indices = @transform_6, window_bounds = array<i64: 1, 128>}, {transform_indices = @transform_7, window_bounds = array<i64: 16, 128>}]} {
    %c0 = arith.constant 0 : index
    %c0_0 = arith.constant 0 : index
    %0 = vector.load %arg2[%c0, %c0_0] : memref<16x128xf32, #tpu.memory_space<vmem>>, vector<16x128xf32>
    %c0_1 = arith.constant 0 : index
    %c0_2 = arith.constant 0 : index
    %1 = vector.load %arg3[%c0_1, %c0_2] : memref<128x128xf32, #tpu.memory_space<vmem>>, vector<128x128xf32>
    %cst = arith.constant dense<0.000000e+00> : vector<16x128xf32>
    %2 = tpu.matmul %0, %1, %cst {dimension_numbers = #tpu.dot_dimension_numbers<[1], [0], [0], [1], [0, 0, 1, 1], [], []>} : vector<16x128xf32>, vector<128x128xf32>, vector<16x128xf32> -> vector<16x128xf32>
    %c0_3 = arith.constant 0 : index
    %c0_4 = arith.constant 0 : index
    %3 = vector.load %arg4[%c0_3, %c0_4] : memref<1x128xf32, #tpu.memory_space<vmem>>, vector<1x128xf32>
    %4 = vector.broadcast %3 : vector<1x128xf32> to vector<16x128xf32>
    %5 = arith.addf %2, %4 : vector<16x128xf32>
    %cst_5 = arith.constant 0.000000e+00 : f32
    %6 = vector.broadcast %cst_5 : f32 to vector<16x128xf32>
    %7 = arith.maximumf %5, %6 : vector<16x128xf32>
    %c0_6 = arith.constant 0 : index
    %c0_7 = arith.constant 0 : index
    %8 = vector.load %arg5[%c0_6, %c0_7] : memref<128x128xf32, #tpu.memory_space<vmem>>, vector<128x128xf32>
    %cst_8 = arith.constant dense<0.000000e+00> : vector<16x128xf32>
    %9 = tpu.matmul %7, %8, %cst_8 {dimension_numbers = #tpu.dot_dimension_numbers<[1], [0], [0], [1], [0, 0, 1, 1], [], []>} : vector<16x128xf32>, vector<128x128xf32>, vector<16x128xf32> -> vector<16x128xf32>
    %c0_9 = arith.constant 0 : index
    %c0_10 = arith.constant 0 : index
    %10 = vector.load %arg6[%c0_9, %c0_10] : memref<1x128xf32, #tpu.memory_space<vmem>>, vector<1x128xf32>
    %11 = vector.broadcast %10 : vector<1x128xf32> to vector<16x128xf32>
    %12 = arith.addf %9, %11 : vector<16x128xf32>
    %13 = arith.addf %12, %0 : vector<16x128xf32>
    %cst_11 = arith.constant dense<0.000000e+00> : vector<16xf32>
    %14 = vector.multi_reduction <add>, %13, %cst_11 [1] : vector<16x128xf32> to vector<16xf32>
    %15 = vector.shape_cast %14 : vector<16xf32> to vector<16x1xf32>
    %cst_12 = arith.constant 3.125000e-02 : f32
    %16 = vector.broadcast %cst_12 : f32 to vector<16x1xf32>
    %17 = arith.mulf %15, %16 : vector<16x1xf32>
    %18 = arith.mulf %13, %13 : vector<16x128xf32>
    %cst_13 = arith.constant dense<0.000000e+00> : vector<16xf32>
    %19 = vector.multi_reduction <add>, %18, %cst_13 [1] : vector<16x128xf32> to vector<16xf32>
    %20 = vector.shape_cast %19 : vector<16xf32> to vector<16x1xf32>
    %cst_14 = arith.constant 3.125000e-02 : f32
    %21 = vector.broadcast %cst_14 : f32 to vector<16x1xf32>
    %22 = arith.mulf %20, %21 : vector<16x1xf32>
    %23 = arith.mulf %17, %17 : vector<16x1xf32>
    %24 = arith.subf %22, %23 : vector<16x1xf32>
    %cst_15 = arith.constant 0.000000e+00 : f32
    %25 = vector.broadcast %cst_15 : f32 to vector<16x1xf32>
    %26 = arith.maximumf %24, %25 : vector<16x1xf32>
    %cst_16 = arith.constant 9.99999974E-6 : f32
    %27 = vector.broadcast %cst_16 : f32 to vector<16x1xf32>
    %28 = arith.addf %26, %27 : vector<16x1xf32>
    %29 = math.rsqrt %28 : vector<16x1xf32>
    %30 = vector.broadcast %17 : vector<16x1xf32> to vector<16x128xf32>
    %31 = arith.subf %13, %30 : vector<16x128xf32>
    %32 = vector.broadcast %29 : vector<16x1xf32> to vector<16x128xf32>
    %33 = arith.mulf %31, %32 : vector<16x128xf32>
    %c0_17 = arith.constant 0 : index
    %c0_18 = arith.constant 0 : index
    %34 = vector.load %arg7[%c0_17, %c0_18] : memref<1x128xf32, #tpu.memory_space<vmem>>, vector<1x128xf32>
    %35 = vector.broadcast %34 : vector<1x128xf32> to vector<16x128xf32>
    %36 = arith.mulf %33, %35 : vector<16x128xf32>
    %c0_19 = arith.constant 0 : index
    %c0_20 = arith.constant 0 : index
    %37 = vector.load %arg8[%c0_19, %c0_20] : memref<1x128xf32, #tpu.memory_space<vmem>>, vector<1x128xf32>
    %38 = vector.broadcast %37 : vector<1x128xf32> to vector<16x128xf32>
    %39 = arith.addf %36, %38 : vector<16x128xf32>
    %c0_21 = arith.constant 0 : index
    %c0_22 = arith.constant 0 : index
    %40 = vector.load %arg9[%c0_21, %c0_22] : memref<16x128xf32, #tpu.memory_space<vmem>>, vector<16x128xf32>
    tpu.vector_store %arg9[%c0_21, %c0_22], %39 {strides = array<i32>} : memref<16x128xf32, #tpu.memory_space<vmem>>, vector<16x128xf32>,
    return
  }
  func.func @transform_0(%arg0: i32, %arg1: i32) -> (i32, i32) {
    %c0_i32 = arith.constant 0 : i32
    %c0_i32_0 = arith.constant 0 : i32
    return %arg0, %c0_i32 : i32, i32
  }
  func.func @transform_1(%arg0: i32, %arg1: i32) -> (i32, i32) {
    %c0_i32 = arith.constant 0 : i32
    %c0_i32_0 = arith.constant 0 : i32
    return %c0_i32, %arg1 : i32, i32
  }
  func.func @transform_2(%arg0: i32, %arg1: i32) -> (i32, i32) {
    %c0_i32 = arith.constant 0 : i32
    %c0_i32_0 = arith.constant 0 : i32
    return %c0_i32, %arg1 : i32, i32
  }
  func.func @transform_3(%arg0: i32, %arg1: i32) -> (i32, i32) {
    %c0_i32 = arith.constant 0 : i32
    %c0_i32_0 = arith.constant 0 : i32
    return %arg1, %c0_i32 : i32, i32
  }
  func.func @transform_4(%arg0: i32, %arg1: i32) -> (i32, i32) {
    %c0_i32 = arith.constant 0 : i32
    %c0_i32_0 = arith.constant 0 : i32
    %c0_i32_1 = arith.constant 0 : i32
    return %c0_i32, %c0_i32_0 : i32, i32
  }
  func.func @transform_5(%arg0: i32, %arg1: i32) -> (i32, i32) {
    %c0_i32 = arith.constant 0 : i32
    %c0_i32_0 = arith.constant 0 : i32
    %c0_i32_1 = arith.constant 0 : i32
    return %c0_i32, %c0_i32_0 : i32, i32
  }
  func.func @transform_6(%arg0: i32, %arg1: i32) -> (i32, i32) {
    %c0_i32 = arith.constant 0 : i32
    %c0_i32_0 = arith.constant 0 : i32
    %c0_i32_1 = arith.constant 0 : i32
    return %c0_i32, %c0_i32_0 : i32, i32
  }
  func.func @transform_7(%arg0: i32, %arg1: i32) -> (i32, i32) {
    %c0_i32 = arith.constant 0 : i32
    %c0_i32_0 = arith.constant 0 : i32
    return %arg0, %c0_i32 : i32, i32
  }
}

</mosaic_0001>

<bundles_post_ra>
// kernel: tpu_custom_call.1
= control target key start
LH: loop header
LB: loop body
LE: loop exit
PB: predicated region body
PF: predicated region fallthrough
CT: control target
= control target key end

     0   :  { %12 = vsyncpa [#allocation3], 0  ;;  %s743_s0 = inlined_call_operand.hbm [shape: f32[16,128], index: 0, kind: input, shape index: {}]   ;;  %s744_s1 = inlined_call_operand.hbm [shape: f32[128,128], index: 1, kind: input, shape index: {}]   ;;  %s745_s2 = inlined_call_operand.vmem [shape: f32[1,128], index: 2, kind: input, shape index: {}]   ;;  %s746_s3 = inlined_call_operand.hbm [shape: f32[128,128], index: 3, kind: input, shape index: {}]   ;;  %s747_s4 = inlined_call_operand.vmem [shape: f32[1,128], index: 4, kind: input, shape index: {}]   ;;  %s748_s5 = inlined_call_operand.vmem [shape: f32[1,128], index: 5, kind: input, shape index: {}]   ;;  %s749_s6 = inlined_call_operand.vmem [shape: f32[1,128], index: 6, kind: input, shape index: {}]   ;;  %s750_s7 = inlined_call_operand.hbm [shape: f32[16,128], index: 7, kind: output, shape index: {}]  }
   0x1   :  { %13 = vsyncpa [#allocation6], 0 }
   0x2   :  { %14 = vsyncpa [#allocation4], 0  ;;  %s614_s24 = smov [#allocation5]   ;;  %s615_s26 = smov [#allocation2]  }
   0x3   :  { %s32_s25 = sshll.u32 %s614_s24, 4  ;;  %s20_s27 = sshll.u32 %s615_s26, 4  ;;  %s33_s25 = int_to_ptr.vmem [resolvable:$true] %s32_s25  ;;  %s660_s27 = int_to_ptr.vmem [resolvable:$true] %s20_s27 }
   0x4   :  { %s520_s30 = scalar_lea.hbm %s744_s1, 2048 }
   0x5   :  { %p521_p0 = scmp.ne.s32.totalorder %s744_s1, %s520_s30  ;;  %p524_p1 = scmp.lt.u32.totalorder %s520_s30, %s744_s1 }
   0x7   :  { %p526_p2 = pnand %p524_p1, %p521_p0 }
   0x9   :  { %529 = shalt.err (!%p526_p2)
}
   0xa   :  { %s530_s12 = scalar_lea.vmem %s33_s25, 2048  ;;  %p535_p4 = scmp.lt.s32.totalorder %s33_s25, %s33_s25 }
   0xb   :  { %p531_p3 = scmp.ne.s32.totalorder %s33_s25, %s530_s12  ;;  %p536_p5 = scmp.lt.s32.totalorder %s530_s12, %s530_s12 }
   0xd   :  { %p537_p6 = por %p536_p5, %p535_p4 }
   0xf   :  { %p538_p7 = pnand %p537_p6, %p531_p3 }
  0x11   :  { %541 = shalt.err (!%p538_p7)
}
  0x12   :  { %s616_s13 = smov 128   ;;  %s617_s14 = smov 8  }
  0x13   :  { %38 = dma.hbm_to_vmem [thread:$0]  %s744_s1, 2048, %s33_s25, [#allocation6], %s616_s13, %s616_s13, %s617_s14  }
  0x14   :  { %s542_s19 = scalar_lea.hbm %s743_s0, 256 }
  0x15   :  { %p543_p8 = scmp.ne.s32.totalorder %s743_s0, %s542_s19  ;;  %p546_p9 = scmp.lt.u32.totalorder %s542_s19, %s743_s0 }
  0x17   :  { %p548_p10 = pnand %p546_p9, %p543_p8 }
  0x19   :  { %551 = shalt.err (!%p548_p10)
}
  0x1a   :  { %s552_s24 = scalar_lea.vmem %s660_s27, 256  ;;  %p557_p12 = scmp.lt.s32.totalorder %s660_s27, %s660_s27 }
  0x1b   :  { %p553_p11 = scmp.ne.s32.totalorder %s660_s27, %s552_s24  ;;  %p558_p13 = scmp.lt.s32.totalorder %s552_s24, %s552_s24 }
  0x1d   :  { %p559_p0 = por %p558_p13, %p557_p12 }
  0x1f   :  { %p560_p1 = pnand %p559_p0, %p553_p11 }
  0x21   :  { %563 = shalt.err (!%p560_p1)
}
  0x22   :  { %26 = dma.hbm_to_vmem [thread:$0]  %s743_s0, 256, %s660_s27, [#allocation3], %s616_s13, %s616_s13, %s617_s14  }
  0x23   :  { %s618_s26 = smov [#allocation7]   ;;  %s564_s8 = scalar_lea.hbm %s746_s3, 2048 }
  0x24   :  { %s46_s28 = sshll.u32 %s618_s26, 4  ;;  %p565_p2 = scmp.ne.s32.totalorder %s746_s3, %s564_s8  ;;  %s47_s28 = int_to_ptr.vmem [resolvable:$true] %s46_s28 }
  0x25   :  { %p568_p3 = scmp.lt.u32.totalorder %s564_s8, %s746_s3 }
  0x27   :  { %p570_p4 = pnand %p568_p3, %p565_p2 }
  0x29   :  { %573 = shalt.err (!%p570_p4)
}
  0x2a   :  { %s574_s15 = scalar_lea.vmem %s47_s28, 2048  ;;  %p579_p6 = scmp.lt.s32.totalorder %s47_s28, %s47_s28 }
  0x2b   :  { %p575_p5 = scmp.ne.s32.totalorder %s47_s28, %s574_s15  ;;  %p580_p7 = scmp.lt.s32.totalorder %s574_s15, %s574_s15 }
  0x2d   :  { %p581_p8 = por %p580_p7, %p579_p6 }
  0x2f   :  { %p582_p9 = pnand %p581_p8, %p575_p5 }
  0x31   :  { %585 = shalt.err (!%p582_p9)
}
  0x32   :  { %52 = dma.hbm_to_vmem [thread:$0]  %s746_s3, 2048, %s47_s28, [#allocation6], %s616_s13, %s616_s13, %s617_s14  }
  0x33   :  { %608 = dma.done.wait [#allocation3], 256  }
  0x34   :  { %609 = vsyncadd [#allocation3], 4294967040 }
  0x35   :  { %610 = dma.done.wait [#allocation6], 4096  }
  0x36   :  { %611 = vsyncadd [#allocation6], 4294963200  ;;  %v70_v0 = vld [vmem:[#allocation5] sm:$0xff]  ;;  %v71_v1 = vld [vmem:[#allocation5 + $0x8] sm:$0xff]  ;;  %s619_s21 = smov [#allocation8]  }
  0x37   :  { %v72_v2 = vld [vmem:[#allocation5 + $0x10] sm:$0xff]  ;;  %v446_v3 = vpack.c.bf16 %v71_v1, %v70_v0  ;;  %v73_v4 = vld [vmem:[#allocation5 + $0x18] sm:$0xff]  ;;  %v74_v6 = vld [vmem:[#allocation5 + $0x20] sm:$0xff]  ;;  %s323_s22 = sshll.u32 %s619_s21, 4  ;;  %s324_s22 = int_to_ptr.vmem [resolvable:$true] %s323_s22 }
  0x38   :  { %v450_v5 = vpack.c.bf16 %v73_v4, %v72_v2  ;;  %v75_v7 = vld [vmem:[#allocation5 + $0x28] sm:$0xff]  ;;  %v76_v9 = vld [vmem:[#allocation5 + $0x30] sm:$0xff]  ;;  %v77_v10 = vld [vmem:[#allocation5 + $0x38] sm:$0xff]  ;;  %s586_s23 = scalar_lea.vmem %s324_s22, 256  ;;  %p591_p11 = scmp.lt.s32.totalorder %s324_s22, %s324_s22 }
  0x39   :  { %447 = vmatprep.subr.bf16.mxu0 %v446_v3  ;;  %v454_v8 = vpack.c.bf16 %v75_v7, %v74_v6  ;;  %v712_v11 = vld [vmem:[#allocation2] sm:$0xff]  ;;  %v170_v12 = vld [vmem:[#allocation7] sm:$0xff]  ;;  %v171_v13 = vld [vmem:[#allocation7 + $0x8] sm:$0xff]  ;;  %v458_v20 = vpack.c.bf16 %v77_v10, %v76_v9  ;;  %p587_p10 = scmp.ne.s32.totalorder %s324_s22, %s586_s23  ;;  %p592_p12 = scmp.lt.s32.totalorder %s586_s23, %s586_s23 }
  0x3a   :  { %449 = vmatpush3.bf16.msra.mxu0 %v446_v3  ;;  %408 = vmatprep.mubr.f32.mxu0 %v712_v11  ;;  %v172_v14 = vld [vmem:[#allocation7 + $0x10] sm:$0xff]  ;;  %v478_v15 = vpack.c.bf16 %v171_v13, %v170_v12  ;;  %v173_v16 = vld [vmem:[#allocation7 + $0x18] sm:$0xff]  ;;  %v174_v18 = vld [vmem:[#allocation7 + $0x20] sm:$0xff] }
  0x3b   :  { %451 = vmatprep.subr.bf16.mxu0 %v450_v5  ;;  %v482_v17 = vpack.c.bf16 %v173_v16, %v172_v14  ;;  %v175_v19 = vld [vmem:[#allocation7 + $0x28] sm:$0xff]  ;;  %v78_v21 = vld [vmem:[#allocation5 + $0x40] sm:$0xff]  ;;  %v176_v24 = vld [vmem:[#allocation7 + $0x30] sm:$0xff]  ;;  %p593_p13 = por %p592_p12, %p591_p11 }
  0x3c   :  { %479 = vmatprep.subr.bf16.mxu1 %v478_v15  ;;  %v79_v22 = vld [vmem:[#allocation5 + $0x48] sm:$0xff]  ;;  %v486_v23 = vpack.c.bf16 %v175_v19, %v174_v18  ;;  %v177_v25 = vld [vmem:[#allocation7 + $0x38] sm:$0xff]  ;;  %v80_v27 = vld [vmem:[#allocation5 + $0x50] sm:$0xff] }
  0x3d   :  { %481 = vmatpush3.bf16.msra.mxu1 %v478_v15  ;;  %v462_v26 = vpack.c.bf16 %v79_v22, %v78_v21  ;;  %v81_v28 = vld [vmem:[#allocation5 + $0x58] sm:$0xff]  ;;  %v490_v29 = vpack.c.bf16 %v177_v25, %v176_v24  ;;  %v178_v30 = vld [vmem:[#allocation7 + $0x40] sm:$0xff]  ;;  %v179_v31 = vld [vmem:[#allocation7 + $0x48] sm:$0xff]  ;;  %p594_p0 = pnand %p593_p13, %p587_p10 }
  0x3e   :  { %453 = vmatpush3.bf16.msra.mxu0 %v450_v5  ;;  %483 = vmatprep.subr.bf16.mxu1 %v482_v17  ;;  %v466_v32 = vpack.c.bf16 %v81_v28, %v80_v27  ;;  %v82_v33 = vld [vmem:[#allocation5 + $0x60] sm:$0xff]  ;;  %v83_v34 = vld [vmem:[#allocation5 + $0x68] sm:$0xff]  ;;  %v494_v35 = vpack.c.bf16 %v179_v31, %v178_v30  ;;  %v180_v36 = vld [vmem:[#allocation7 + $0x50] sm:$0xff] }
  0x3f   :  { %455 = vmatprep.subr.bf16.mxu0 %v454_v8  ;;  %v181_v37 = vld [vmem:[#allocation7 + $0x58] sm:$0xff]  ;;  %v470_v38 = vpack.c.bf16 %v83_v34, %v82_v33  ;;  %v84_v39 = vld [vmem:[#allocation5 + $0x70] sm:$0xff]  ;;  %v182_v42 = vld [vmem:[#allocation7 + $0x60] sm:$0xff] }
  0x40   :  { %v85_v40 = vld [vmem:[#allocation5 + $0x78] sm:$0xff]  ;;  %v498_v41 = vpack.c.bf16 %v181_v37, %v180_v36  ;;  %v183_v43 = vld [vmem:[#allocation7 + $0x68] sm:$0xff]  ;;  %v184_v47 = vld [vmem:[#allocation7 + $0x70] sm:$0xff] }
  0x41   :  { %485 = vmatpush3.bf16.msra.mxu1 %v482_v17  ;;  %v474_v44 = vpack.c.bf16 %v85_v40, %v84_v39  ;;  %v502_v45 = vpack.c.bf16 %v183_v43, %v182_v42  ;;  %v69_v46 = vld [vmem:[#allocation2 + $0x8] sm:$0xff]  ;;  %v336_v50 = vld [vmem:[%s745_s2] ss:$0 sm:$0xff] }
  0x42   :  { %457 = vmatpush3.bf16.msra.mxu0 %v454_v8  ;;  %487 = vmatprep.subr.bf16.mxu1 %v486_v23  ;;  %v185_v48 = vld [vmem:[#allocation7 + $0x78] sm:$0xff]  ;;  %v337_v57 = vld [vmem:[%s747_s4] ss:$0 sm:$0xff] }
  0x43   :  { %459 = vmatprep.subr.bf16.mxu0 %v458_v20  ;;  %v506_v49 = vpack.c.bf16 %v185_v48, %v184_v47  ;;  %v339_v22 = vld [vmem:[%s749_s6] ss:$0 sm:$0xff] }
  0x45   :  { %489 = vmatpush3.bf16.msra.mxu1 %v486_v23 }
  0x46   :  { %461 = vmatpush3.bf16.msra.mxu0 %v458_v20  ;;  %491 = vmatprep.subr.bf16.mxu1 %v490_v29  ;;  %v338_v20 = vld [vmem:[%s748_s5] ss:$0 sm:$0xff] }
  0x47   :  { %463 = vmatprep.subr.bf16.mxu0 %v462_v26 }
  0x49   :  { %493 = vmatpush3.bf16.msra.mxu1 %v490_v29 }
  0x4a   :  { %465 = vmatpush3.bf16.msra.mxu0 %v462_v26  ;;  %495 = vmatprep.subr.bf16.mxu1 %v494_v35 }
  0x4b   :  { %467 = vmatprep.subr.bf16.mxu0 %v466_v32 }
  0x4d   :  { %497 = vmatpush3.bf16.msra.mxu1 %v494_v35 }
  0x4e   :  { %469 = vmatpush3.bf16.msra.mxu0 %v466_v32  ;;  %499 = vmatprep.subr.bf16.mxu1 %v498_v41 }
  0x4f   :  { %471 = vmatprep.subr.bf16.mxu0 %v470_v38 }
  0x51   :  { %501 = vmatpush3.bf16.msra.mxu1 %v498_v41 }
  0x52   :  { %473 = vmatpush3.bf16.msra.mxu0 %v470_v38  ;;  %503 = vmatprep.subr.bf16.mxu1 %v502_v45 }
  0x53   :  { %475 = vmatprep.subr.bf16.mxu0 %v474_v44 }
  0x55   :  { %505 = vmatpush3.bf16.msra.mxu1 %v502_v45 }
  0x56   :  { %477 = vmatpush3.bf16.msra.mxu0 %v474_v44  ;;  %507 = vmatprep.subr.bf16.mxu1 %v506_v49 }
  0x59   :  { %409 = vmatmul.mubr.f32.vlgmr.msra.gmra.mrb[0].mxu0 %v69_v46  ;;  %509 = vmatpush3.bf16.msra.mxu1 %v506_v49 }
 0x12c   :  { %v410_v51 = vpop.f32.mrb[0].mxu0 }
 0x12d   :  { %v165_v52 = vadd.f32 %v410_v51, %v336_v50  ;;  %v159_v53 = vpop.f32.mrb[1].mxu0 }
 0x12e   :  { %v160_v54 = vadd.f32 %v336_v50, %v159_v53 }
 0x12f   :  { %v169_v56 = vmax.f32 %v165_v52, 0.0 }
 0x130   :  { %v168_v55 = vmax.f32 %v160_v54, 0.0 }
 0x132   :  { %443 = vmatprep.mubr.f32.mxu1 %v168_v55 }
 0x133   :  { %444 = vmatmul.mubr.f32.vlgmr.msra.gmra.mrb[0].mxu1 %v169_v56 }
 0x206   :  { %v445_v58 = vpop.f32.mrb[0].mxu1 }
 0x207   :  { %v259_v59 = vpop.f32.mrb[1].mxu1  ;;  %v265_v60 = vadd.f32 %v445_v58, %v337_v57 }
 0x208   :  { %v260_v61 = vadd.f32 %v337_v57, %v259_v59 }
 0x209   :  { %v269_v63 = vadd.f32 %v265_v60, %v69_v46 }
 0x20a   :  { %v268_v62 = vadd.f32 %v260_v61, %v712_v11 }
 0x20b   :  { %v277_v1 = vmul.f32 %v269_v63, %v269_v63 }
 0x20c   :  { %270 = vadd.xlane.f32.xlu0 %v268_v62  ;;  %v276_v0 = vmul.f32 %v268_v62, %v268_v62 }
 0x20e   :  { %278 = vadd.xlane.f32.xlu1 %v276_v0 }
 0x210   :  { %272 = vadd.xlane.f32.xlu0 %v269_v63 }
 0x212   :  { %280 = vadd.xlane.f32.xlu1 %v277_v1 }
 0x299   :  { %v271_v2 = vpop.xlane.xlu0 %270 }
 0x29a   :  { %v274_v3 = vmul.f32 0.03125, %v271_v2 }
 0x29b   :  { %v279_v4 = vpop.xlane.xlu1 %278 }
 0x29c   :  { %v284_v5 = vmul.f32 %v274_v3, %v274_v3  ;;  %v282_v6 = vmul.f32 0.03125, %v279_v4  ;;  %v294_v18 = vsub.f32 %v268_v62, %v274_v3 }
 0x29d   :  { %v273_v7 = vpop.xlane.xlu0 %272 }
 0x29e   :  { %v286_v8 = vsub.f32 %v282_v6, %v284_v5  ;;  %v275_v9 = vmul.f32 0.03125, %v273_v7 }
 0x29f   :  { %v281_v10 = vpop.xlane.xlu1 %280 }
 0x2a0   :  { %v288_v12 = vmax.f32 %v286_v8, 0.0  ;;  %v285_v13 = vmul.f32 %v275_v9, %v275_v9  ;;  %v283_v14 = vmul.f32 0.03125, %v281_v10  ;;  %v295_v23 = vsub.f32 %v269_v63, %v275_v9 }
 0x2a2   :  { %v290_v11 = vadd.f32 1e-05, %v288_v12  ;;  %v287_v15 = vsub.f32 %v283_v14, %v285_v13 }
 0x2a4   :  { %516 = vrsqrt.f32 %v290_v11  ;;  %v289_v16 = vmax.f32 %v287_v15, 0.0 }
 0x2a6   :  { %v291_v17 = vadd.f32 1e-05, %v289_v16 }
 0x2a8   :  { %518 = vrsqrt.f32 %v291_v17 }
 0x2ae   :  { %v517_v19 = vpop.eup %516 }
 0x2af   :  { %v296_v21 = vmul.f32 %v517_v19, %v294_v18 }
 0x2b1   :  { %v305_v24 = vmul.f32 %v338_v20, %v296_v21 }
 0x2b2   :  { %v519_v25 = vpop.eup %518 }
 0x2b3   :  { %v297_v26 = vmul.f32 %v519_v25, %v295_v23  ;;  %v314_v27 = vadd.f32 %v339_v22, %v305_v24 }
 0x2b5   :  { %v306_v28 = vmul.f32 %v338_v20, %v297_v26  ;;  %316 = vst [vmem:[#allocation8] sm:$0xff] %v314_v27 }
 0x2b7   :  { %v315_v29 = vadd.f32 %v339_v22, %v306_v28 }
 0x2b9   :  { %317 = vst [vmem:[#allocation8 + $0x8] sm:$0xff] %v315_v29 }
 0x2ba   :  { %597 = shalt.err (!%p594_p0)
}
 0x2bb   :  { %s598_s24 = scalar_lea.hbm %s750_s7, 256 }
 0x2bc   :  { %p599_p1 = scmp.ne.s32.totalorder %s750_s7, %s598_s24  ;;  %p602_p2 = scmp.lt.u32.totalorder %s598_s24, %s750_s7 }
 0x2be   :  { %p604_p3 = pnand %p602_p2, %p599_p1 }
 0x2c0   :  { %607 = shalt.err (!%p604_p3)
}
 0x2c1   :  { %329 = dma.vmem_to_hbm [thread:$0]  %s324_s22, 256, %s750_s7, [#allocation4], %s616_s13, %s616_s13, %s617_s14  }
 0x2c2   :  { %612 = dma.done.wait [#allocation4], 256  }
 0x2c3   :  { %613 = vsyncadd [#allocation4], 4294967040 }
 0x2c4   :  { %333 = vsyncpa [#allocation3], 1 }
 0x2c5   :  { %334 = vsyncpa [#allocation6], 1 }
 0x2c6   :  { %335 = vsyncpa [#allocation4], 1 }

</bundles_post_ra>
